<compile_context>
chip_gen: v7x
topology: tpu7x:2x2x1
jax: 0.10.0
libtpu: 0.0.40
codegen_flags: <defaults>
</compile_context>

<pallas_src>
import functools

import jax
import jax.numpy as jnp
from jax.experimental import pallas as pl
from jax.experimental.pallas import tpu as pltpu


def _round_up(v, m):
    return ((v + m - 1) // m) * m


def _d2rl_q_kernel(xu_ref,
                   wx_ref, b1_ref,
                   w2h_ref, b2_ref,
                   w3h_ref, b3_ref,
                   w4h_ref, b4_ref,
                   wot_ref, bo_ref,
                   out_ref, *, hp, compute_dtype):
    xu = xu_ref[...].astype(compute_dtype)

    # One wide matmul computes every xu-dependent partial sum:
    #   xw[:, 0:hp]        = xu @ W1
    #   xw[:, k*hp:(k+1)*hp] = xu @ Wk_x  (xu half of the D2RL concat), k=1..3
    xw = jnp.dot(xu, wx_ref[...], preferred_element_type=jnp.float32)

    # l1_1 + ReLU
    x = jnp.maximum(xw[:, 0:hp] + b1_ref[...], 0.0)

    # l1_2 / l1_3 / l1_4: relu(cat([x, xu]) @ W + b) == relu(x@Wh + xu@Wx + b)
    for k, (wh_ref, b_ref) in enumerate(
            ((w2h_ref, b2_ref), (w3h_ref, b3_ref), (w4h_ref, b4_ref)), start=1):
        y = jnp.dot(x.astype(compute_dtype), wh_ref[...],
                    preferred_element_type=jnp.float32)
        x = jnp.maximum(y + xw[:, k * hp:(k + 1) * hp] + b_ref[...], 0.0)

    # out1, lane-packed: contract Wo^T (padded to 8 sublane rows, row 0 real)
    # against x's hidden dim -> [8, TB] lane-major; store row 0 (+ bias).
    q = jax.lax.dot_general(
        wot_ref[...], x.astype(compute_dtype),
        dimension_numbers=(((1,), (1,)), ((), ())),
        preferred_element_type=jnp.float32)
    out_ref[...] = (q[0:1, :] + bo_ref[...]).astype(out_ref.dtype)


def d2rl_q_forward(xu, params, *, block_b=1024, compute_dtype=jnp.float32):
    """xu: [B, state_dim + action_dim] f32.  Returns [B, 1] f32 Q values."""
    w1, b1, w2, b2, w3, b3, w4, b4, wo, bo = params
    B, sa = xu.shape
    h = w1.shape[1]
    hp = _round_up(h, 128)          # lane-aligned hidden dim
    wdt = jnp.dtype(compute_dtype)  # weight storage / MXU input dtype

    def pad2(a, rows, cols, dtype):
        out = jnp.zeros((rows, cols), dtype)
        return out.at[:a.shape[0], :a.shape[1]].set(a.astype(dtype))

    # Split the deep-layer weights: rows [:h] multiply x, rows [h:] multiply xu.
    w2h, w2x = w2[:h], w2[h:]
    w3h, w3x = w3[:h], w3[h:]
    w4h, w4x = w4[:h], w4[h:]

    # Stack every xu-consuming weight into one [sa, 4*hp] matrix (one matmul).
    wx = jnp.concatenate([pad2(w1, sa, hp, wdt), pad2(w2x, sa, hp, wdt),
                          pad2(w3x, sa, hp, wdt), pad2(w4x, sa, hp, wdt)],
                         axis=1)
    w2h_p = pad2(w2h, hp, hp, wdt)
    w3h_p = pad2(w3h, hp, hp, wdt)
    w4h_p = pad2(w4h, hp, hp, wdt)
    wot = pad2(wo.T, 8, hp, wdt)            # output head, transposed, row 0 real

    # Biases stay f32 (bias-add / ReLU stay full precision on the VPU).
    b1_p = pad2(b1, 1, hp, jnp.float32)
    b2_p = pad2(b2, 1, hp, jnp.float32)
    b3_p = pad2(b3, 1, hp, jnp.float32)
    b4_p = pad2(b4, 1, hp, jnp.float32)
    bo_p = bo.astype(jnp.float32).reshape(1, 1)

    # ---- Batch tile selection -------------------------------------------
    # - big tiles (default up to 1024 rows) amortize per-step overhead,
    # - B > 256 always yields >= 2 grid steps so v7x megacore gets both TCs,
    # - TB is a multiple of 128 whenever the batch is tiled (sublane/lane
    #   aligned xu loads and lane-dense (1, TB) output stores).
    block_b = max(128, (int(block_b) // 128) * 128)
    if B <= 256:
        TB = B                                   # single step, block == full
    else:
        TB = min(block_b, _round_up((B + 1) // 2, 128))
    grid = (pl.cdiv(B, TB),)

    x_spec = pl.BlockSpec((TB, sa), lambda i: (i, 0))
    out_spec = pl.BlockSpec((1, TB), lambda i: (0, i))   # lane-packed Q row

    def resident(a):  # weights/biases: same block every step -> stay in VMEM
        return pl.BlockSpec(a.shape, lambda i: (0, 0))

    weights = (wx, b1_p, w2h_p, b2_p, w3h_p, b3_p, w4h_p, b4_p, wot, bo_p)
    weight_bytes = sum(int(w.size) * w.dtype.itemsize for w in weights)

    # Explicit scoped-VMEM budget: double-buffered weights + io tiles plus the
    # f32 activation temporaries (xw, x/y, q), with 2x headroom.
    io_bytes = TB * sa * xu.dtype.itemsize + TB * 4
    act_bytes = (4 * hp + 3 * hp + 8) * TB * 4
    vmem_limit = int(min(128 << 20,
                         max(32 << 20,
                             2 * (2 * weight_bytes + 2 * io_bytes + act_bytes))))

    flops = 2 * B * (sa * 4 * hp + 3 * hp * hp + 8 * hp)
    bytes_accessed = (int(xu.size) * xu.dtype.itemsize + weight_bytes + B * 4)
    cost = pl.CostEstimate(flops=flops, transcendentals=0,
                           bytes_accessed=bytes_accessed)

    kernel = functools.partial(_d2rl_q_kernel, hp=hp, compute_dtype=wdt)

    out_row = pl.pallas_call(
        kernel,
        out_shape=jax.ShapeDtypeStruct((1, B), jnp.float32),
        grid=grid,
        in_specs=[x_spec] + [resident(w) for w in weights],
        out_specs=out_spec,
        compiler_params=pltpu.CompilerParams(
            dimension_semantics=("parallel",),
            vmem_limit_bytes=vmem_limit),
        cost_estimate=cost,
    )(xu, *weights)

    return out_row.reshape(B, 1)


def init_d2rl_q_params(key, state_dim, action_dim, h_size):
    """PyTorch-style init: U(-1/sqrt(fan_in), 1/sqrt(fan_in)).

    Weights stored already transposed as [in_features, out_features]; biases
    as [1, out_features].
    """
    sa = state_dim + action_dim
    in_dim = sa + h_size
    keys = jax.random.split(key, 10)

    def linear(kw, kb, fan_in, fan_out):
        bound = float(fan_in) ** -0.5
        w = jax.random.uniform(kw, (fan_in, fan_out), jnp.float32,
                               minval=-bound, maxval=bound)
        b = jax.random.uniform(kb, (1, fan_out), jnp.float32,
                               minval=-bound, maxval=bound)
        return w, b

    w1, b1 = linear(keys[0], keys[1], sa, h_size)       # l1_1
    w2, b2 = linear(keys[2], keys[3], in_dim, h_size)   # l1_2
    w3, b3 = linear(keys[4], keys[5], in_dim, h_size)   # l1_3
    w4, b4 = linear(keys[6], keys[7], in_dim, h_size)   # l1_4
    wo, bo = linear(keys[8], keys[9], h_size, 1)        # out1
    return (w1, b1, w2, b2, w3, b3, w4, b4, wo, bo)


def _reference_forward(xu, params):
    w1, b1, w2, b2, w3, b3, w4, b4, wo, bo = params
    x = jnp.maximum(xu @ w1 + b1, 0.0)
    x = jnp.concatenate([x, xu], axis=1)
    x = jnp.maximum(x @ w2 + b2, 0.0)
    x = jnp.concatenate([x, xu], axis=1)
    x = jnp.maximum(x @ w3 + b3, 0.0)
    x = jnp.concatenate([x, xu], axis=1)
    x = jnp.maximum(x @ w4 + b4, 0.0)
    return x @ wo + bo


if __name__ == "__main__":
    key = jax.random.PRNGKey(0)
    k_params, k_xu = jax.random.split(key)

    state_dim, action_dim, h_size = 8, 4, 32
    sa_dim = state_dim + action_dim
    params = init_d2rl_q_params(k_params, state_dim, action_dim, h_size)

    # --- Test 1: tiny batch (single grid step), f32 compute -----------------
    xu_small = jax.random.normal(k_xu, (2, sa_dim), dtype=jnp.float32)
    out = jax.block_until_ready(d2rl_q_forward(xu_small, params))
    ref = _reference_forward(xu_small, params)
    assert out.shape == (2, 1)
    assert jnp.allclose(out, ref, atol=1e-4, rtol=1e-4)

    # --- Test 2: default tiling, B=512 -> TB=256, grid=(2,) (megacore) ------
    xu_big = jax.random.normal(jax.random.PRNGKey(1), (512, sa_dim),
                               dtype=jnp.float32)
    out2 = jax.block_until_ready(d2rl_q_forward(xu_big, params))
    ref2 = _reference_forward(xu_big, params)
    assert out2.shape == (512, 1)
    assert jnp.allclose(out2, ref2, atol=1e-4, rtol=1e-4)

    # --- Test 3: smaller tile -> TB=128, grid=(4,), f32 ---------------------
    out3 = jax.block_until_ready(d2rl_q_forward(xu_big, params, block_b=128))
    assert jnp.allclose(out3, ref2, atol=1e-4, rtol=1e-4)

    # --- Test 4: bf16 matmul inputs / f32 accumulation (MXU fast path) ------
    out4 = jax.block_until_ready(
        d2rl_q_forward(xu_big, params, compute_dtype=jnp.bfloat16))
    assert jnp.allclose(out4, ref2, atol=1e-1, rtol=1e-1)

    print("KERNEL_OK")
</pallas_src>

<mosaic_0001>
module attributes {stable_mosaic.version = 11 : i64} {
  func.func @_d2rl_q_kernel(%arg0: i32, %arg1: memref<2x12xf32, #tpu.memory_space<vmem>>, %arg2: memref<12x512xf32, #tpu.memory_space<vmem>>, %arg3: memref<1x128xf32, #tpu.memory_space<vmem>>, %arg4: memref<128x128xf32, #tpu.memory_space<vmem>>, %arg5: memref<1x128xf32, #tpu.memory_space<vmem>>, %arg6: memref<128x128xf32, #tpu.memory_space<vmem>>, %arg7: memref<1x128xf32, #tpu.memory_space<vmem>>, %arg8: memref<128x128xf32, #tpu.memory_space<vmem>>, %arg9: memref<1x128xf32, #tpu.memory_space<vmem>>, %arg10: memref<8x128xf32, #tpu.memory_space<vmem>>, %arg11: memref<1x1xf32, #tpu.memory_space<vmem>>, %arg12: memref<1x2xf32, #tpu.memory_space<vmem>>) attributes {dimension_semantics = [#tpu.dimension_semantics<parallel>], iteration_bounds = array<i64: 1>, scalar_prefetch = 0 : i64, scratch_operands = 0 : i64, tpu.core_type = #tpu.core_type<tc>, window_params = [{transform_indices = @transform_0, window_bounds = array<i64: 2, 12>}, {pipeline_mode = #tpu.pipeline_mode<synchronous>, transform_indices = @transform_1, window_bounds = array<i64: 12, 512>}, {pipeline_mode = #tpu.pipeline_mode<synchronous>, transform_indices = @transform_2, window_bounds = array<i64: 1, 128>}, {pipeline_mode = #tpu.pipeline_mode<synchronous>, transform_indices = @transform_3, window_bounds = array<i64: 128, 128>}, {pipeline_mode = #tpu.pipeline_mode<synchronous>, transform_indices = @transform_4, window_bounds = array<i64: 1, 128>}, {pipeline_mode = #tpu.pipeline_mode<synchronous>, transform_indices = @transform_5, window_bounds = array<i64: 128, 128>}, {pipeline_mode = #tpu.pipeline_mode<synchronous>, transform_indices = @transform_6, window_bounds = array<i64: 1, 128>}, {pipeline_mode = #tpu.pipeline_mode<synchronous>, transform_indices = @transform_7, window_bounds = array<i64: 128, 128>}, {pipeline_mode = #tpu.pipeline_mode<synchronous>, transform_indices = @transform_8, window_bounds = array<i64: 1, 128>}, {pipeline_mode = #tpu.pipeline_mode<synchronous>, transform_indices = @transform_9, window_bounds = array<i64: 8, 128>}, {pipeline_mode = #tpu.pipeline_mode<synchronous>, transform_indices = @transform_10, window_bounds = array<i64: 1, 1>}, {transform_indices = @transform_11, window_bounds = array<i64: 1, 2>}]} {
    %c0 = arith.constant 0 : index
    %c0_0 = arith.constant 0 : index
    %0 = vector.load %arg1[%c0, %c0_0] : memref<2x12xf32, #tpu.memory_space<vmem>>, vector<2x12xf32>
    %c0_1 = arith.constant 0 : index
    %c0_2 = arith.constant 0 : index
    %1 = vector.load %arg2[%c0_1, %c0_2] : memref<12x512xf32, #tpu.memory_space<vmem>>, vector<12x512xf32>
    %cst = arith.constant dense<0.000000e+00> : vector<2x512xf32>
    %2 = tpu.matmul %0, %1, %cst {dimension_numbers = #tpu.dot_dimension_numbers<[1], [0], [0], [1], [0, 0, 1, 1], [], []>} : vector<2x12xf32>, vector<12x512xf32>, vector<2x512xf32> -> vector<2x512xf32>
    %3 = vector.extract_strided_slice %2 {offsets = [0, 0], sizes = [2, 128], strides = [1, 1]} : vector<2x512xf32> to vector<2x128xf32>
    %c0_3 = arith.constant 0 : index
    %c0_4 = arith.constant 0 : index
    %4 = vector.load %arg3[%c0_3, %c0_4] : memref<1x128xf32, #tpu.memory_space<vmem>>, vector<1x128xf32>
    %5 = vector.broadcast %4 : vector<1x128xf32> to vector<2x128xf32>
    %6 = arith.addf %3, %5 : vector<2x128xf32>
    %cst_5 = arith.constant 0.000000e+00 : f32
    %7 = vector.broadcast %cst_5 : f32 to vector<2x128xf32>
    %8 = arith.maximumf %6, %7 : vector<2x128xf32>
    %c0_6 = arith.constant 0 : index
    %c0_7 = arith.constant 0 : index
    %9 = vector.load %arg4[%c0_6, %c0_7] : memref<128x128xf32, #tpu.memory_space<vmem>>, vector<128x128xf32>
    %cst_8 = arith.constant dense<0.000000e+00> : vector<2x128xf32>
    %10 = tpu.matmul %8, %9, %cst_8 {dimension_numbers = #tpu.dot_dimension_numbers<[1], [0], [0], [1], [0, 0, 1, 1], [], []>} : vector<2x128xf32>, vector<128x128xf32>, vector<2x128xf32> -> vector<2x128xf32>
    %11 = vector.extract_strided_slice %2 {offsets = [0, 128], sizes = [2, 128], strides = [1, 1]} : vector<2x512xf32> to vector<2x128xf32>
    %12 = arith.addf %10, %11 : vector<2x128xf32>
    %c0_9 = arith.constant 0 : index
    %c0_10 = arith.constant 0 : index
    %13 = vector.load %arg5[%c0_9, %c0_10] : memref<1x128xf32, #tpu.memory_space<vmem>>, vector<1x128xf32>
    %14 = vector.broadcast %13 : vector<1x128xf32> to vector<2x128xf32>
    %15 = arith.addf %12, %14 : vector<2x128xf32>
    %cst_11 = arith.constant 0.000000e+00 : f32
    %16 = vector.broadcast %cst_11 : f32 to vector<2x128xf32>
    %17 = arith.maximumf %15, %16 : vector<2x128xf32>
    %c0_12 = arith.constant 0 : index
    %c0_13 = arith.constant 0 : index
    %18 = vector.load %arg6[%c0_12, %c0_13] : memref<128x128xf32, #tpu.memory_space<vmem>>, vector<128x128xf32>
    %cst_14 = arith.constant dense<0.000000e+00> : vector<2x128xf32>
    %19 = tpu.matmul %17, %18, %cst_14 {dimension_numbers = #tpu.dot_dimension_numbers<[1], [0], [0], [1], [0, 0, 1, 1], [], []>} : vector<2x128xf32>, vector<128x128xf32>, vector<2x128xf32> -> vector<2x128xf32>
    %20 = vector.extract_strided_slice %2 {offsets = [0, 256], sizes = [2, 128], strides = [1, 1]} : vector<2x512xf32> to vector<2x128xf32>
    %21 = arith.addf %19, %20 : vector<2x128xf32>
    %c0_15 = arith.constant 0 : index
    %c0_16 = arith.constant 0 : index
    %22 = vector.load %arg7[%c0_15, %c0_16] : memref<1x128xf32, #tpu.memory_space<vmem>>, vector<1x128xf32>
    %23 = vector.broadcast %22 : vector<1x128xf32> to vector<2x128xf32>
    %24 = arith.addf %21, %23 : vector<2x128xf32>
    %cst_17 = arith.constant 0.000000e+00 : f32
    %25 = vector.broadcast %cst_17 : f32 to vector<2x128xf32>
    %26 = arith.maximumf %24, %25 : vector<2x128xf32>
    %c0_18 = arith.constant 0 : index
    %c0_19 = arith.constant 0 : index
    %27 = vector.load %arg8[%c0_18, %c0_19] : memref<128x128xf32, #tpu.memory_space<vmem>>, vector<128x128xf32>
    %cst_20 = arith.constant dense<0.000000e+00> : vector<2x128xf32>
    %28 = tpu.matmul %26, %27, %cst_20 {dimension_numbers = #tpu.dot_dimension_numbers<[1], [0], [0], [1], [0, 0, 1, 1], [], []>} : vector<2x128xf32>, vector<128x128xf32>, vector<2x128xf32> -> vector<2x128xf32>
    %29 = vector.extract_strided_slice %2 {offsets = [0, 384], sizes = [2, 128], strides = [1, 1]} : vector<2x512xf32> to vector<2x128xf32>
    %30 = arith.addf %28, %29 : vector<2x128xf32>
    %c0_21 = arith.constant 0 : index
    %c0_22 = arith.constant 0 : index
    %31 = vector.load %arg9[%c0_21, %c0_22] : memref<1x128xf32, #tpu.memory_space<vmem>>, vector<1x128xf32>
    %32 = vector.broadcast %31 : vector<1x128xf32> to vector<2x128xf32>
    %33 = arith.addf %30, %32 : vector<2x128xf32>
    %cst_23 = arith.constant 0.000000e+00 : f32
    %34 = vector.broadcast %cst_23 : f32 to vector<2x128xf32>
    %35 = arith.maximumf %33, %34 : vector<2x128xf32>
    %c0_24 = arith.constant 0 : index
    %c0_25 = arith.constant 0 : index
    %36 = vector.load %arg10[%c0_24, %c0_25] : memref<8x128xf32, #tpu.memory_space<vmem>>, vector<8x128xf32>
    %cst_26 = arith.constant dense<0.000000e+00> : vector<8x2xf32>
    %37 = tpu.matmul %36, %35, %cst_26 {dimension_numbers = #tpu.dot_dimension_numbers<[1], [1], [0], [0], [0, 0, 1, 0], [], []>} : vector<8x128xf32>, vector<2x128xf32>, vector<8x2xf32> -> vector<8x2xf32>
    %38 = vector.extract_strided_slice %37 {offsets = [0, 0], sizes = [1, 2], strides = [1, 1]} : vector<8x2xf32> to vector<1x2xf32>
    %c0_27 = arith.constant 0 : index
    %c0_28 = arith.constant 0 : index
    %39 = vector.load %arg11[%c0_27, %c0_28] : memref<1x1xf32, #tpu.memory_space<vmem>>, vector<1x1xf32>
    %40 = vector.broadcast %39 : vector<1x1xf32> to vector<1x2xf32>
    %41 = arith.addf %38, %40 : vector<1x2xf32>
    %c0_29 = arith.constant 0 : index
    %c0_30 = arith.constant 0 : index
    %42 = vector.load %arg12[%c0_29, %c0_30] : memref<1x2xf32, #tpu.memory_space<vmem>>, vector<1x2xf32>
    tpu.vector_store %arg12[%c0_29, %c0_30], %41 {strides = array<i32>} : memref<1x2xf32, #tpu.memory_space<vmem>>, vector<1x2xf32>,
    return
  }
  func.func @transform_0(%arg0: i32) -> (i32, i32) {
    %c0_i32 = arith.constant 0 : i32
    %c0_i32_0 = arith.constant 0 : i32
    return %arg0, %c0_i32 : i32, i32
  }
  func.func @transform_1(%arg0: i32) -> (i32, i32) {
    %c0_i32 = arith.constant 0 : i32
    %c0_i32_0 = arith.constant 0 : i32
    %c0_i32_1 = arith.constant 0 : i32
    return %c0_i32, %c0_i32_0 : i32, i32
  }
  func.func @transform_2(%arg0: i32) -> (i32, i32) {
    %c0_i32 = arith.constant 0 : i32
    %c0_i32_0 = arith.constant 0 : i32
    %c0_i32_1 = arith.constant 0 : i32
    return %c0_i32, %c0_i32_0 : i32, i32
  }
  func.func @transform_3(%arg0: i32) -> (i32, i32) {
    %c0_i32 = arith.constant 0 : i32
    %c0_i32_0 = arith.constant 0 : i32
    %c0_i32_1 = arith.constant 0 : i32
    return %c0_i32, %c0_i32_0 : i32, i32
  }
  func.func @transform_4(%arg0: i32) -> (i32, i32) {
    %c0_i32 = arith.constant 0 : i32
    %c0_i32_0 = arith.constant 0 : i32
    %c0_i32_1 = arith.constant 0 : i32
    return %c0_i32, %c0_i32_0 : i32, i32
  }
  func.func @transform_5(%arg0: i32) -> (i32, i32) {
    %c0_i32 = arith.constant 0 : i32
    %c0_i32_0 = arith.constant 0 : i32
    %c0_i32_1 = arith.constant 0 : i32
    return %c0_i32, %c0_i32_0 : i32, i32
  }
  func.func @transform_6(%arg0: i32) -> (i32, i32) {
    %c0_i32 = arith.constant 0 : i32
    %c0_i32_0 = arith.constant 0 : i32
    %c0_i32_1 = arith.constant 0 : i32
    return %c0_i32, %c0_i32_0 : i32, i32
  }
  func.func @transform_7(%arg0: i32) -> (i32, i32) {
    %c0_i32 = arith.constant 0 : i32
    %c0_i32_0 = arith.constant 0 : i32
    %c0_i32_1 = arith.constant 0 : i32
    return %c0_i32, %c0_i32_0 : i32, i32
  }
  func.func @transform_8(%arg0: i32) -> (i32, i32) {
    %c0_i32 = arith.constant 0 : i32
    %c0_i32_0 = arith.constant 0 : i32
    %c0_i32_1 = arith.constant 0 : i32
    return %c0_i32, %c0_i32_0 : i32, i32
  }
  func.func @transform_9(%arg0: i32) -> (i32, i32) {
    %c0_i32 = arith.constant 0 : i32
    %c0_i32_0 = arith.constant 0 : i32
    %c0_i32_1 = arith.constant 0 : i32
    return %c0_i32, %c0_i32_0 : i32, i32
  }
  func.func @transform_10(%arg0: i32) -> (i32, i32) {
    %c0_i32 = arith.constant 0 : i32
    %c0_i32_0 = arith.constant 0 : i32
    %c0_i32_1 = arith.constant 0 : i32
    return %c0_i32, %c0_i32_0 : i32, i32
  }
  func.func @transform_11(%arg0: i32) -> (i32, i32) {
    %c0_i32 = arith.constant 0 : i32
    %c0_i32_0 = arith.constant 0 : i32
    return %c0_i32, %arg0 : i32, i32
  }
}

</mosaic_0001>

<bundles_post_ra>
// kernel: tpu_custom_call.1
= control target key start
LH: loop header
LB: loop body
LE: loop exit
PB: predicated region body
PF: predicated region fallthrough
CT: control target
= control target key end

     0   :  { %s1269_s0 = inlined_call_operand.vmem [shape: f32[2,12], index: 0, kind: input, shape index: {}]   ;;  %s1270_s1 = inlined_call_operand.hbm [shape: f32[12,512], index: 1, kind: input, shape index: {}]   ;;  %s1271_s2 = inlined_call_operand.vmem [shape: f32[1,128], index: 2, kind: input, shape index: {}]   ;;  %s1272_s3 = inlined_call_operand.hbm [shape: f32[128,128], index: 3, kind: input, shape index: {}]   ;;  %s1273_s4 = inlined_call_operand.vmem [shape: f32[1,128], index: 4, kind: input, shape index: {}]   ;;  %s1274_s5 = inlined_call_operand.hbm [shape: f32[128,128], index: 5, kind: input, shape index: {}]   ;;  %s1275_s6 = inlined_call_operand.vmem [shape: f32[1,128], index: 6, kind: input, shape index: {}]   ;;  %s1276_s7 = inlined_call_operand.hbm [shape: f32[128,128], index: 7, kind: input, shape index: {}]   ;;  %s1277_s8 = inlined_call_operand.vmem [shape: f32[1,128], index: 8, kind: input, shape index: {}]   ;;  %s1278_s9 = inlined_call_operand.vmem [shape: f32[8,128], index: 9, kind: input, shape index: {}]   ;;  %s1279_s10 = inlined_call_operand.<no memory space> [shape: f32[1,1], index: 10, kind: input, shape index: {}]   ;;  %s1280_s11 = inlined_call_operand.hbm [shape: f32[1,2], index: 11, kind: output, shape index: {}]  }
   0x1   :  { %v16_v0 = vstv %s1279_s10 }
   0x2   :  { %17 = vst [vmem:[#allocation2] sm:$0x1] %v16_v0 }
   0x3   :  { %18 = vsyncpa [#allocation4], 0 }
   0x4   :  { %19 = vsyncpa [#allocation7], 0 }
   0x5   :  { %20 = vsyncpa [#allocation10], 0 }
   0x6   :  { %21 = vsyncpa [#allocation5], 0  ;;  %s1049_s19 = smov [#allocation6]   ;;  %s931_s23 = scalar_lea.hbm %s1272_s3, 2048 }
   0x7   :  { %s43_s20 = sshll.u32 %s1049_s19, 4  ;;  %p932_p0 = scmp.ne.s32.totalorder %s1272_s3, %s931_s23  ;;  %s44_s20 = int_to_ptr.vmem [resolvable:$true] %s43_s20 }
   0x8   :  { %p935_p1 = scmp.lt.u32.totalorder %s931_s23, %s1272_s3 }
   0xa   :  { %p937_p2 = pnand %p935_p1, %p932_p0 }
   0xc   :  { %940 = shalt.err (!%p937_p2)
}
   0xd   :  { %s941_s10 = scalar_lea.vmem %s44_s20, 2048  ;;  %p946_p4 = scmp.lt.s32.totalorder %s44_s20, %s44_s20 }
   0xe   :  { %p942_p3 = scmp.ne.s32.totalorder %s44_s20, %s941_s10  ;;  %p947_p5 = scmp.lt.s32.totalorder %s941_s10, %s941_s10 }
  0x10   :  { %p948_p6 = por %p947_p5, %p946_p4 }
  0x12   :  { %p949_p7 = pnand %p948_p6, %p942_p3 }
  0x14   :  { %952 = shalt.err (!%p949_p7)
}
  0x15   :  { %s1050_s28 = smov 128   ;;  %s1051_s29 = smov 8  }
  0x16   :  { %49 = dma.hbm_to_vmem [thread:$0]  %s1272_s3, 2048, %s44_s20, [#allocation7], %s1050_s28, %s1050_s28, %s1051_s29  }
  0x17   :  { %s1052_s13 = smov [#allocation3]   ;;  %s953_s17 = scalar_lea.hbm %s1270_s1, 1024 }
  0x18   :  { %s29_s14 = sshll.u32 %s1052_s13, 4  ;;  %p954_p8 = scmp.ne.s32.totalorder %s1270_s1, %s953_s17  ;;  %s30_s14 = int_to_ptr.vmem [resolvable:$true] %s29_s14 }
  0x19   :  { %p957_p9 = scmp.lt.u32.totalorder %s953_s17, %s1270_s1 }
  0x1b   :  { %p959_p10 = pnand %p957_p9, %p954_p8 }
  0x1d   :  { %962 = shalt.err (!%p959_p10)
}
  0x1e   :  { %s963_s23 = scalar_lea.vmem %s30_s14, 1024  ;;  %p968_p12 = scmp.lt.s32.totalorder %s30_s14, %s30_s14 }
  0x1f   :  { %p964_p11 = scmp.ne.s32.totalorder %s30_s14, %s963_s23  ;;  %p969_p13 = scmp.lt.s32.totalorder %s963_s23, %s963_s23 }
  0x21   :  { %p970_p0 = por %p969_p13, %p968_p12 }
  0x23   :  { %p971_p1 = pnand %p970_p0, %p964_p11 }
  0x25   :  { %974 = shalt.err (!%p971_p1)
}
  0x26   :  { %s1053_s3 = smov 512   ;;  %s1054_s20 = smov 32  }
  0x27   :  { %35 = dma.hbm_to_vmem [thread:$0]  %s1270_s1, 1024, %s30_s14, [#allocation4], %s1053_s3, %s1053_s3, %s1054_s20  }
  0x28   :  { %s1055_s26 = smov [#allocation8]   ;;  %s1056_s10 = smov [#allocation9]  }
  0x29   :  { %s57_s27 = sshll.u32 %s1055_s26, 4  ;;  %s71_s30 = sshll.u32 %s1056_s10, 4  ;;  %s58_s27 = int_to_ptr.vmem [resolvable:$true] %s57_s27  ;;  %s1153_s30 = int_to_ptr.vmem [resolvable:$true] %s71_s30 }
  0x2a   :  { %s975_s15 = scalar_lea.hbm %s1274_s5, 2048 }
  0x2b   :  { %p976_p2 = scmp.ne.s32.totalorder %s1274_s5, %s975_s15  ;;  %p979_p3 = scmp.lt.u32.totalorder %s975_s15, %s1274_s5 }
  0x2d   :  { %p981_p4 = pnand %p979_p3, %p976_p2 }
  0x2f   :  { %984 = shalt.err (!%p981_p4)
}
  0x30   :  { %s985_s1 = scalar_lea.vmem %s58_s27, 2048  ;;  %p990_p6 = scmp.lt.s32.totalorder %s58_s27, %s58_s27 }
  0x31   :  { %p986_p5 = scmp.ne.s32.totalorder %s58_s27, %s985_s1  ;;  %p991_p7 = scmp.lt.s32.totalorder %s985_s1, %s985_s1 }
  0x33   :  { %p992_p8 = por %p991_p7, %p990_p6 }
  0x35   :  { %p993_p9 = pnand %p992_p8, %p986_p5 }
  0x37   :  { %996 = shalt.err (!%p993_p9)
}
  0x38   :  { %63 = dma.hbm_to_vmem [thread:$0]  %s1274_s5, 2048, %s58_s27, [#allocation7], %s1050_s28, %s1050_s28, %s1051_s29  }
  0x39   :  { %s997_s3 = scalar_lea.hbm %s1276_s7, 2048 }
  0x3a   :  { %p998_p10 = scmp.ne.s32.totalorder %s1276_s7, %s997_s3  ;;  %p1001_p11 = scmp.lt.u32.totalorder %s997_s3, %s1276_s7 }
  0x3c   :  { %p1003_p12 = pnand %p1001_p11, %p998_p10 }
  0x3e   :  { %1006 = shalt.err (!%p1003_p12)
}
  0x3f   :  { %s1007_s10 = scalar_lea.vmem %s1153_s30, 2048  ;;  %p1012_p0 = scmp.lt.s32.totalorder %s1153_s30, %s1153_s30 }
  0x40   :  { %p1008_p13 = scmp.ne.s32.totalorder %s1153_s30, %s1007_s10  ;;  %p1013_p1 = scmp.lt.s32.totalorder %s1007_s10, %s1007_s10 }
  0x42   :  { %p1014_p2 = por %p1013_p1, %p1012_p0 }
  0x44   :  { %p1015_p3 = pnand %p1014_p2, %p1008_p13 }
  0x46   :  { %1018 = shalt.err (!%p1015_p3)
}
  0x47   :  { %77 = dma.hbm_to_vmem [thread:$0]  %s1276_s7, 2048, %s1153_s30, [#allocation10], %s1050_s28, %s1050_s28, %s1051_s29  }
  0x48   :  { %1041 = dma.done.wait [#allocation4], 1024  }
  0x49   :  { %1042 = vsyncadd [#allocation4], 4294966272 }
  0x4a   :  { %1043 = dma.done.wait [#allocation7], 4096  }
  0x4b   :  { %1044 = vsyncadd [#allocation7], 4294963200 }
  0x4c   :  { %1045 = dma.done.wait [#allocation10], 2048  }
  0x4d   :  { %1046 = vsyncadd [#allocation10], 4294965248  ;;  %v1057_v1 = vmov 0.0   ;;  %v1058_v2 = vmov 0.0|0.0   ;;  %vm109_vm0 = vcmask 1043456   ;;  %vm1059_vm1 = vmmov 1  }
  0x4e   :  { %186 = vmatprep.mubr.f32.mxu1 %v1057_v1  ;;  %844 = vmatprep.subr.bf16.mxu0 %v1058_v2  ;;  %vm1192_vm2 = vmpackc.low %vm109_vm0, %vm1059_vm1  ;;  %v98_v4 = vld [vmem:[#allocation3 + $0x8] sm:$0xff]  ;;  %v97_v6 = vld [vmem:[#allocation3] sm:$0xff]  ;;  %vm105_vm3 = vcmask 97280   ;;  %vm1060_vm4 = vmmov 0   ;;  %s1062_s17 = smov [#allocation11]   ;;  %vm640_vm5 = vcmask 8192  }
  0x4f   :  { %v102_v5 = vld [vmem:[#allocation3 + $0x28] sm:$0xf]  ;;  %v101_v8 = vld [vmem:[#allocation3 + $0x20] sm:$0xf]  ;;  %v275_v12 = vld [vmem:[#allocation6 + $0x10] sm:$0xff]  ;;  %754 = vmatprep.mubr.msk.f32.mxu0 %vm1060_vm4, %v1057_v1  ;;  %s648_s18 = sshll.u32 %s1062_s17, 4  ;;  %s649_s18 = int_to_ptr.vmem [resolvable:$true] %s648_s18 }
  0x50   :  { %v832_v7 = vpack.c.bf16 %v102_v5, %v98_v4  ;;  %v273_v9 = vld [vmem:[#allocation6] sm:$0xff]  ;;  %v835_v10 = vpack.c.bf16 %v101_v8, %v97_v6  ;;  %v274_v11 = vld [vmem:[#allocation6 + $0x8] sm:$0xff]  ;;  %v276_v13 = vld [vmem:[#allocation6 + $0x18] sm:$0xff]  ;;  %s1023_s19 = scalar_lea.vmem %s649_s18, 32  ;;  %p1024_p5 = scmp.lt.s32.totalorder %s649_s18, %s649_s18 }
  0x51   :  { %v845_v14 = vpack.c.bf16 %v274_v11, %v273_v9  ;;  %v96_v15 = vld [vmem:[%s1269_s0] sm:$0x3]  ;;  %v848_v16 = vpack.c.bf16 %v276_v13, %v275_v12  ;;  %v278_v18 = vld [vmem:[#allocation6 + $0x28] sm:$0xff]  ;;  %v279_v20 = vld [vmem:[#allocation6 + $0x30] sm:$0xff] }
  0x52   :  { %834 = vmatprep.subr.msk.bf16.mxu1 %vm1192_vm2, %v832_v7  ;;  %v277_v17 = vld [vmem:[#allocation6 + $0x20] sm:$0xff]  ;;  %v280_v21 = vld [vmem:[#allocation6 + $0x38] sm:$0xff]  ;;  %v282_v24 = vld [vmem:[#allocation6 + $0x48] sm:$0xff] }
  0x53   :  { %837 = vmatpush1.bf16.msk.msra.mxu1 %vm1192_vm2, %v835_v10  ;;  %846 = vmatpush3.bf16.msra.mxu0 %v845_v14  ;;  %v851_v19 = vpack.c.bf16 %v278_v18, %v277_v17  ;;  %v854_v22 = vpack.c.bf16 %v280_v21, %v279_v20  ;;  %v281_v23 = vld [vmem:[#allocation6 + $0x40] sm:$0xff]  ;;  %v283_v26 = vld [vmem:[#allocation6 + $0x50] sm:$0xff]  ;;  %v284_v27 = vld [vmem:[#allocation6 + $0x58] sm:$0xff] }
  0x54   :  { %847 = vmatprep.subr.bf16.mxu0 %v1058_v2  ;;  %v857_v25 = vpack.c.bf16 %v282_v24, %v281_v23  ;;  %v860_v28 = vpack.c.bf16 %v284_v27, %v283_v26  ;;  %v285_v29 = vld [vmem:[#allocation6 + $0x60] sm:$0xff]  ;;  %v286_v30 = vld [vmem:[#allocation6 + $0x68] sm:$0xff]  ;;  %v287_v32 = vld [vmem:[#allocation6 + $0x70] sm:$0xff] }
  0x55   :  { %v863_v31 = vpack.c.bf16 %v286_v30, %v285_v29  ;;  %v288_v33 = vld [vmem:[#allocation6 + $0x78] sm:$0xff]  ;;  %v99_v37 = vld [vmem:[#allocation3 + $0x10] sm:$0xff]  ;;  %v368_v40 = vld [vmem:[#allocation8] sm:$0xff] }
  0x56   :  { %661 = vmatmul.mubr.msk.f32.vlgmr.msra.gmra.mrb[0].mxu1 %vm105_vm3, %v96_v15  ;;  %v866_v34 = vpack.c.bf16 %v288_v33, %v287_v32  ;;  %v100_v35 = vld [vmem:[#allocation3 + $0x18] sm:$0xff]  ;;  %v103_v39 = vld [vmem:[#allocation3 + $0x30] sm:$0xf]  ;;  %v369_v41 = vld [vmem:[#allocation8 + $0x8] sm:$0xff] }
  0x57   :  { %257 = vmatprep.mubr.f32.mxu1 %v1057_v1  ;;  %849 = vmatpush3.bf16.msra.mxu0 %v848_v16  ;;  %v104_v36 = vld [vmem:[#allocation3 + $0x38] sm:$0xf]  ;;  %v841_v42 = vpack.c.bf16 %v103_v39, %v99_v37  ;;  %v869_v43 = vpack.c.bf16 %v369_v41, %v368_v40  ;;  %v370_v44 = vld [vmem:[#allocation8 + $0x10] sm:$0xff]  ;;  %v372_v47 = vld [vmem:[#allocation8 + $0x20] sm:$0xff] }
  0x58   :  { %850 = vmatprep.subr.bf16.mxu0 %v1058_v2  ;;  %v838_v38 = vpack.c.bf16 %v104_v36, %v100_v35  ;;  %v371_v45 = vld [vmem:[#allocation8 + $0x18] sm:$0xff]  ;;  %v373_v48 = vld [vmem:[#allocation8 + $0x28] sm:$0xff]  ;;  %v374_v50 = vld [vmem:[#allocation8 + $0x30] sm:$0xff] }
  0x59   :  { %v872_v46 = vpack.c.bf16 %v371_v45, %v370_v44  ;;  %v875_v49 = vpack.c.bf16 %v373_v48, %v372_v47  ;;  %v375_v51 = vld [vmem:[#allocation8 + $0x38] sm:$0xff]  ;;  %v376_v53 = vld [vmem:[#allocation8 + $0x40] sm:$0xff]  ;;  %v377_v54 = vld [vmem:[#allocation8 + $0x48] sm:$0xff] }
  0x5a   :  { %840 = vmatprep.subr.msk.bf16.mxu1 %vm1192_vm2, %v838_v38  ;;  %v878_v52 = vpack.c.bf16 %v375_v51, %v374_v50  ;;  %v881_v55 = vpack.c.bf16 %v377_v54, %v376_v53  ;;  %v378_v56 = vld [vmem:[#allocation8 + $0x50] sm:$0xff]  ;;  %v379_v57 = vld [vmem:[#allocation8 + $0x58] sm:$0xff]  ;;  %v380_v0 = vld [vmem:[#allocation8 + $0x60] sm:$0xff]  ;;  %v635_v53 = vlaneseq }
  0x5b   :  { %852 = vmatpush3.bf16.msra.mxu0 %v851_v19  ;;  %843 = vmatpush1.bf16.msk.msra.mxu1 %vm1192_vm2, %v841_v42  ;;  %v884_v58 = vpack.c.bf16 %v379_v57, %v378_v56  ;;  %v665_v59 = vld [vmem:[%s1271_s2] ss:$0 sm:$0xff]  ;;  %v381_v3 = vld [vmem:[#allocation8 + $0x68] sm:$0xff]  ;;  %v382_v5 = vld [vmem:[#allocation8 + $0x70] sm:$0xff] }
  0x5c   :  { %853 = vmatprep.subr.bf16.mxu0 %v1058_v2  ;;  %868 = vmatprep.subr.bf16.mxu1 %v1058_v2  ;;  %v887_v4 = vpack.c.bf16 %v381_v3, %v380_v0  ;;  %v383_v6 = vld [vmem:[#allocation8 + $0x78] sm:$0xff]  ;;  %v463_v9 = vld [vmem:[#allocation9] sm:$0xff]  ;;  %v464_v10 = vld [vmem:[#allocation9 + $0x8] sm:$0xff]  ;;  %v636_v54 = vshrl.u32 %v635_v53, 7 }
  0x5d   :  { %v890_v7 = vpack.c.bf16 %v383_v6, %v382_v5  ;;  %v465_v11 = vld [vmem:[#allocation9 + $0x10] sm:$0xff]  ;;  %v893_v13 = vpack.c.bf16 %v464_v10, %v463_v9  ;;  %v466_v14 = vld [vmem:[#allocation9 + $0x18] sm:$0xff]  ;;  %v467_v16 = vld [vmem:[#allocation9 + $0x20] sm:$0xff] }
  0x5e   :  { %664 = vmatmul.mubr.msk.f32.vlgmr.msra.gmra.mrb[2].mxu1 %vm105_vm3, %v96_v15  ;;  %v896_v15 = vpack.c.bf16 %v466_v14, %v465_v11  ;;  %v468_v17 = vld [vmem:[#allocation9 + $0x28] sm:$0xff]  ;;  %v469_v19 = vld [vmem:[#allocation9 + $0x30] sm:$0xff]  ;;  %v470_v20 = vld [vmem:[#allocation9 + $0x38] sm:$0xff] }
  0x5f   :  { %855 = vmatpush3.bf16.msra.mxu0 %v854_v22  ;;  %870 = vmatpush3.bf16.msra.mxu1 %v869_v43  ;;  %v899_v18 = vpack.c.bf16 %v468_v17, %v467_v16  ;;  %v902_v21 = vpack.c.bf16 %v470_v20, %v469_v19  ;;  %v471_v22 = vld [vmem:[#allocation9 + $0x40] sm:$0xff]  ;;  %v472_v23 = vld [vmem:[#allocation9 + $0x48] sm:$0xff]  ;;  %v474_v26 = vld [vmem:[#allocation9 + $0x58] sm:$0xff] }
  0x60   :  { %856 = vmatprep.subr.bf16.mxu0 %v1058_v2  ;;  %789 = vmatprep.mubr.msk.f32.mxu1 %vm1060_vm4, %v1057_v1  ;;  %v905_v24 = vpack.c.bf16 %v472_v23, %v471_v22  ;;  %v666_v29 = vld [vmem:[%s1273_s4] ss:$0 sm:$0xff]  ;;  %v476_v35 = vld [vmem:[#allocation9 + $0x68] sm:$0xff]  ;;  %v477_v37 = vld [vmem:[#allocation9 + $0x70] sm:$0xff] }
  0x61   :  { %871 = vmatprep.subr.bf16.mxu1 %v1058_v2  ;;  %v478_v38 = vld [vmem:[#allocation9 + $0x78] sm:$0xff] }
  0x62   :  { %v914_v39 = vpack.c.bf16 %v478_v38, %v477_v37  ;;  %v667_v41 = vld [vmem:[%s1275_s6] ss:$0 sm:$0xff] }
  0x63   :  { %858 = vmatpush3.bf16.msra.mxu0 %v857_v25  ;;  %873 = vmatpush3.bf16.msra.mxu1 %v872_v46  ;;  %v473_v25 = vld [vmem:[#allocation9 + $0x50] sm:$0xff]  ;;  %v1061_v46 = vmov 0  }
  0x64   :  { %859 = vmatprep.subr.bf16.mxu0 %v1058_v2  ;;  %874 = vmatprep.subr.bf16.mxu1 %v1058_v2  ;;  %v908_v27 = vpack.c.bf16 %v474_v26, %v473_v25 }
  0x65   :  { %930 = vset.pattern.permute.xlu0 %v1061_v46 }
  0x67   :  { %861 = vmatpush3.bf16.msra.mxu0 %v860_v28  ;;  %876 = vmatpush3.bf16.msra.mxu1 %v875_v49 }
  0x68   :  { %862 = vmatprep.subr.bf16.mxu0 %v1058_v2  ;;  %877 = vmatprep.subr.bf16.mxu1 %v1058_v2 }
  0x6b   :  { %864 = vmatpush3.bf16.msra.mxu0 %v863_v31  ;;  %879 = vmatpush3.bf16.msra.mxu1 %v878_v52  ;;  %v558_v52 = vld [vmem:[%s1278_s9] sm:$0xff] }
  0x6c   :  { %865 = vmatprep.subr.bf16.mxu0 %v1058_v2  ;;  %880 = vmatprep.subr.bf16.mxu1 %v1058_v2 }
  0x6f   :  { %867 = vmatpush3.bf16.msra.mxu0 %v866_v34  ;;  %882 = vmatpush3.bf16.msra.mxu1 %v881_v55  ;;  %v475_v34 = vld [vmem:[#allocation9 + $0x60] sm:$0xff]  ;;  %v637_v55 = vsub.s32 0, %v636_v54 }
  0x70   :  { %892 = vmatprep.subr.bf16.mxu0 %v1058_v2  ;;  %883 = vmatprep.subr.bf16.mxu1 %v1058_v2  ;;  %v911_v36 = vpack.c.bf16 %v476_v35, %v475_v34 }
  0x73   :  { %885 = vmatpush3.bf16.msra.mxu1 %v884_v58 }
  0x74   :  { %886 = vmatprep.subr.bf16.mxu1 %v1058_v2 }
  0x77   :  { %888 = vmatpush3.bf16.msra.mxu1 %v887_v4 }
  0x78   :  { %889 = vmatprep.subr.bf16.mxu1 %v1058_v2 }
  0x7b   :  { %891 = vmatpush3.bf16.msra.mxu1 %v890_v7 }
  0x7c   :  { %827 = vmatprep.subr.mxu1 %v1057_v1 }
 0x129   :  { %v188_v60 = vpop.f32.mrb[0].mxu1 }
 0x12a   :  { %v271_v61 = vadd.f32 %v665_v59, %v188_v60  ;;  %v190_v62 = vpop.f32.mrb[1].mxu1 }
 0x12c   :  { %v272_v63 = vmax.f32 %v271_v61, 0.0 }
 0x12e   :  { %755 = vmatmul.mubr.f32.vlgmr.msra.gmra.mrb[0].mxu0 %v272_v63 }
 0x12f   :  { %824 = vmatprep.mubr.msk.f32.mxu0 %vm1060_vm4, %v1057_v1  ;;  %894 = vmatpush3.bf16.msra.mxu0 %v893_v13 }
 0x130   :  { %895 = vmatprep.subr.bf16.mxu0 %v1058_v2 }
 0x131   :  { %v259_v8 = vpop.f32.mrb[2].mxu1 }
 0x132   :  { %v261_v12 = vpop.f32.mrb[3].mxu1 }
 0x133   :  { %897 = vmatpush3.bf16.msra.mxu0 %v896_v15 }
 0x134   :  { %898 = vmatprep.subr.bf16.mxu0 %v1058_v2 }
 0x137   :  { %900 = vmatpush3.bf16.msra.mxu0 %v899_v18 }
 0x138   :  { %901 = vmatprep.subr.bf16.mxu0 %v1058_v2 }
 0x13b   :  { %903 = vmatpush3.bf16.msra.mxu0 %v902_v21 }
 0x13c   :  { %904 = vmatprep.subr.bf16.mxu0 %v1058_v2 }
 0x13f   :  { %906 = vmatpush3.bf16.msra.mxu0 %v905_v24 }
 0x140   :  { %907 = vmatprep.subr.bf16.mxu0 %v1058_v2 }
 0x143   :  { %909 = vmatpush3.bf16.msra.mxu0 %v908_v27 }
 0x144   :  { %910 = vmatprep.subr.bf16.mxu0 %v1058_v2 }
 0x147   :  { %912 = vmatpush3.bf16.msra.mxu0 %v911_v36 }
 0x148   :  { %913 = vmatprep.subr.bf16.mxu0 %v1058_v2  ;;  %v668_v2 = vld [vmem:[%s1277_s8] ss:$0 sm:$0xff]  ;;  %s1019_s8 = scalar_lea.vmem %s649_s18, 16 }
 0x149   :  { %p1020_p4 = scmp.ne.s32.totalorder %s649_s18, %s1019_s8  ;;  %p1025_p6 = scmp.lt.s32.totalorder %s1023_s19, %s1019_s8 }
 0x14b   :  { %915 = vmatpush3.bf16.msra.mxu0 %v914_v39  ;;  %p1026_p7 = por %p1025_p6, %p1024_p5 }
 0x14d   :  { %p1027_p8 = pnand %p1026_p7, %p1020_p4 }
 0x201   :  { %v355_v28 = vpop.f32.mrb[0].mxu0 }
 0x202   :  { %v356_v30 = vadd.f32 %v355_v28, %v190_v62  ;;  %v756_v31 = vpop.f32.mrb[1].mxu0 }
 0x204   :  { %v366_v32 = vadd.f32 %v666_v29, %v356_v30 }
 0x206   :  { %v367_v33 = vmax.f32 %v366_v32, 0.0 }
 0x208   :  { %790 = vmatmul.mubr.f32.vlgmr.msra.gmra.mrb[4].mxu1 %v367_v33 }
 0x209   :  { %829 = vmatprep.mubr.msk.f32.mxu1 %vm1060_vm4, %v1057_v1  ;;  %v629_v1 = vld [vmem:[#allocation2] sm:$0x1] }
 0x20a   :  { %632 = vperm.xlu0 %930, %v629_v1  }
 0x289   :  { %v633_v56 = vpop.permute.xlu0 %632 }
 0x28a   :  { %v638_v57 = vrot.slane %v633_v56, %v637_v55 }
 0x2db   :  { %v450_v40 = vpop.f32.mrb[4].mxu1 }
 0x2dc   :  { %v451_v42 = vadd.f32 %v450_v40, %v259_v8  ;;  %v791_v43 = vpop.f32.mrb[5].mxu1 }
 0x2de   :  { %v461_v44 = vadd.f32 %v667_v41, %v451_v42 }
 0x2e0   :  { %v462_v45 = vmax.f32 %v461_v44, 0.0 }
 0x2e2   :  { %825 = vmatmul.mubr.f32.vlgmr.msra.gmra.mrb[2].mxu0 %v462_v45 }
 0x3b5   :  { %v545_v47 = vpop.f32.mrb[2].mxu0 }
 0x3b6   :  { %v546_v48 = vadd.f32 %v545_v47, %v261_v12  ;;  %v826_v49 = vpop.f32.mrb[3].mxu0 }
 0x3b8   :  { %v556_v50 = vadd.f32 %v668_v2, %v546_v48 }
 0x3ba   :  { %v557_v51 = vmax.f32 %v556_v50, 0.0 }
 0x3bc   :  { %828 = vmatpush3.xpose.msra.mxu1 %v557_v51 }
 0x3bf   :  { %830 = vmatmul.mubr.f32.vlgmr.msra.gmra.mrb[6].mxu1 %v558_v52 }
 0x492   :  { %v625_v58 = vpop.f32.mrb[6].mxu1 }
 0x493   :  { %v639_v59 = vadd.f32 %v638_v57, %v625_v58  ;;  %v831_v60 = vpop.f32.mrb[7].mxu1 }
 0x495   :  { %641 = vst.msk [vmem:[#allocation11] sm:$0x1] %vm640_vm5, %v639_v59 }
 0x496   :  { %1030 = shalt.err (!%p1027_p8)
}
 0x497   :  { %s1031_s14 = scalar_lea.hbm %s1280_s11, 16 }
 0x498   :  { %p1032_p9 = scmp.ne.s32.totalorder %s1280_s11, %s1031_s14  ;;  %p1035_p10 = scmp.lt.u32.totalorder %s1031_s14, %s1280_s11 }
 0x49a   :  { %p1037_p11 = pnand %p1035_p10, %p1032_p9 }
 0x49c   :  { %1040 = shalt.err (!%p1037_p11)
}
 0x49d   :  { %651 = dma.vmem_to_hbm [thread:$0]  %s649_s18, 16, %s1280_s11, [#allocation5]  }
 0x49e   :  { %1047 = dma.done.wait [#allocation5], 16  }
 0x49f   :  { %1048 = vsyncadd [#allocation5], 4294967280 }
 0x4a0   :  { %655 = vsyncpa [#allocation4], 1 }
 0x4a1   :  { %656 = vsyncpa [#allocation7], 1 }
 0x4a2   :  { %657 = vsyncpa [#allocation10], 1 }
 0x4a3   :  { %658 = vsyncpa [#allocation5], 1 }

</bundles_post_ra>
